<compile_context>
chip_gen: v6e
topology: v6e:2x2x1
jax: 0.10.0
libtpu: 0.0.40
codegen_flags: <defaults>
</compile_context>

<pallas_src>
import functools

import jax
import jax.numpy as jnp
from jax.experimental import pallas as pl
from jax.experimental.pallas import tpu as pltpu


# ----------------------------------------------------------------------------
# Fused MLP2Layer kernel: fc1 + ReLU + fc2 + ReLU + fc3 in one body.
# ----------------------------------------------------------------------------
def _mlp2_kernel(x_ref, w1_ref, b1_ref, w2_ref, b2_ref, w3_ref, b3_ref, o_ref):
    x = x_ref[...]
    h = jnp.dot(x, w1_ref[...], preferred_element_type=jnp.float32) + b1_ref[...]
    h = jnp.maximum(h, 0.0)
    h = jnp.dot(h, w2_ref[...], preferred_element_type=jnp.float32) + b2_ref[...]
    h = jnp.maximum(h, 0.0)
    o = jnp.dot(h, w3_ref[...], preferred_element_type=jnp.float32) + b3_ref[...]
    o_ref[...] = o.astype(o_ref.dtype)


def mlp2_forward(x, params, *, tm=256):
    """MLP2Layer forward.  x: (M, in_size) float32 -> (M, out_size) float32."""
    M, in_size = x.shape
    h1 = params["w1"].shape[1]
    h2 = params["w2"].shape[1]
    out_size = params["w3"].shape[1]
    assert params["w1"].shape == (in_size, h1)
    assert params["w2"].shape == (h1, h2)
    assert params["w3"].shape == (h2, out_size)

    # Row tile: either covers the whole batch, or is a multiple of 8 (sublane).
    if tm >= M:
        tm = M
    else:
        tm = max(8, (tm // 8) * 8)
    grid = (pl.cdiv(M, tm),)

    b1 = params["b1"].reshape(1, -1)
    b2 = params["b2"].reshape(1, -1)
    b3 = params["b3"].reshape(1, -1)

    in_specs = [
        pl.BlockSpec((tm, in_size), lambda i: (i, 0)),        # x: tiled over rows
        pl.BlockSpec((in_size, h1), lambda i: (0, 0)),        # w1: VMEM-resident
        pl.BlockSpec((1, h1), lambda i: (0, 0)),              # b1
        pl.BlockSpec((h1, h2), lambda i: (0, 0)),             # w2
        pl.BlockSpec((1, h2), lambda i: (0, 0)),              # b2
        pl.BlockSpec((h2, out_size), lambda i: (0, 0)),       # w3
        pl.BlockSpec((1, out_size), lambda i: (0, 0)),        # b3
    ]
    out_specs = pl.BlockSpec((tm, out_size), lambda i: (i, 0))

    return pl.pallas_call(
        _mlp2_kernel,
        out_shape=jax.ShapeDtypeStruct((M, out_size), jnp.float32),
        grid_spec=pltpu.PrefetchScalarGridSpec(
            num_scalar_prefetch=0,
            grid=grid,
            in_specs=in_specs,
            out_specs=out_specs,
        ),
        compiler_params=pltpu.CompilerParams(
            dimension_semantics=("parallel",)),   # batch tiles shard across TCs (v7x)
    )(x, params["w1"], b1, params["w2"], b2, params["w3"], b3)


# ----------------------------------------------------------------------------
# Deterministic parameters (shapes match the PyTorch MLP2Layer, stored (in, out))
# ----------------------------------------------------------------------------
def init_params(key, in_size, hidden1, hidden2, out_size):
    ks = jax.random.split(key, 6)

    def dense(k, shape, fan_in):
        return jax.random.normal(k, shape, jnp.float32) / jnp.sqrt(fan_in)

    return {
        "w1": dense(ks[0], (in_size, hidden1), in_size),
        "b1": dense(ks[1], (hidden1,), in_size),
        "w2": dense(ks[2], (hidden1, hidden2), hidden1),
        "b2": dense(ks[3], (hidden2,), hidden1),
        "w3": dense(ks[4], (hidden2, out_size), hidden2),
        "b3": dense(ks[5], (out_size,), hidden2),
    }


def reference_forward(x, p):
    h = jnp.maximum(x @ p["w1"] + p["b1"], 0.0)
    h = jnp.maximum(h @ p["w2"] + p["b2"], 0.0)
    return h @ p["w3"] + p["b3"]


if __name__ == "__main__":
    # Small shapes consistent with MLP2Layer(in_size, hidden1, hidden2, out_size).
    B, IN_SIZE, H1, H2, OUT_SIZE = 64, 40, 64, 64, 5

    key = jax.random.PRNGKey(0)
    kx, kp = jax.random.split(key)
    x = jax.random.normal(kx, (B, IN_SIZE), jnp.float32)
    params = init_params(kp, IN_SIZE, H1, H2, OUT_SIZE)

    # tm=16 -> grid of 4 parallel batch tiles (exercises tiling + edge handling).
    out = mlp2_forward(x, params, tm=16)
    out = jax.block_until_ready(out)

    assert out.shape == (B, OUT_SIZE), out.shape

    ref = reference_forward(x, params)
    assert jnp.allclose(out, ref, atol=1e-2, rtol=1e-2), \
        float(jnp.max(jnp.abs(out - ref)))

    print("KERNEL_OK")
</pallas_src>

<mosaic_0001>
module attributes {stable_mosaic.version = 11 : i64} {
  func.func @_mlp2_kernel(%arg0: i32, %arg1: memref<16x40xf32, #tpu.memory_space<vmem>>, %arg2: memref<40x64xf32, #tpu.memory_space<vmem>>, %arg3: memref<1x64xf32, #tpu.memory_space<vmem>>, %arg4: memref<64x64xf32, #tpu.memory_space<vmem>>, %arg5: memref<1x64xf32, #tpu.memory_space<vmem>>, %arg6: memref<64x5xf32, #tpu.memory_space<vmem>>, %arg7: memref<1x5xf32, #tpu.memory_space<vmem>>, %arg8: memref<16x5xf32, #tpu.memory_space<vmem>>) attributes {dimension_semantics = [#tpu.dimension_semantics<parallel>], iteration_bounds = array<i64: 4>, scalar_prefetch = 0 : i64, scratch_operands = 0 : i64, tpu.core_type = #tpu.core_type<tc>, window_params = [{transform_indices = @transform_0, window_bounds = array<i64: 16, 40>}, {pipeline_mode = #tpu.pipeline_mode<synchronous>, transform_indices = @transform_1, window_bounds = array<i64: 40, 64>}, {pipeline_mode = #tpu.pipeline_mode<synchronous>, transform_indices = @transform_2, window_bounds = array<i64: 1, 64>}, {pipeline_mode = #tpu.pipeline_mode<synchronous>, transform_indices = @transform_3, window_bounds = array<i64: 64, 64>}, {pipeline_mode = #tpu.pipeline_mode<synchronous>, transform_indices = @transform_4, window_bounds = array<i64: 1, 64>}, {pipeline_mode = #tpu.pipeline_mode<synchronous>, transform_indices = @transform_5, window_bounds = array<i64: 64, 5>}, {pipeline_mode = #tpu.pipeline_mode<synchronous>, transform_indices = @transform_6, window_bounds = array<i64: 1, 5>}, {transform_indices = @transform_7, window_bounds = array<i64: 16, 5>}]} {
    %c0 = arith.constant 0 : index
    %c0_0 = arith.constant 0 : index
    %0 = vector.load %arg1[%c0, %c0_0] : memref<16x40xf32, #tpu.memory_space<vmem>>, vector<16x40xf32>
    %c0_1 = arith.constant 0 : index
    %c0_2 = arith.constant 0 : index
    %1 = vector.load %arg2[%c0_1, %c0_2] : memref<40x64xf32, #tpu.memory_space<vmem>>, vector<40x64xf32>
    %cst = arith.constant dense<0.000000e+00> : vector<16x64xf32>
    %2 = tpu.matmul %0, %1, %cst {dimension_numbers = #tpu.dot_dimension_numbers<[1], [0], [0], [1], [0, 0, 1, 1], [], []>} : vector<16x40xf32>, vector<40x64xf32>, vector<16x64xf32> -> vector<16x64xf32>
    %c0_3 = arith.constant 0 : index
    %c0_4 = arith.constant 0 : index
    %3 = vector.load %arg3[%c0_3, %c0_4] : memref<1x64xf32, #tpu.memory_space<vmem>>, vector<1x64xf32>
    %4 = vector.broadcast %3 : vector<1x64xf32> to vector<16x64xf32>
    %5 = arith.addf %2, %4 : vector<16x64xf32>
    %cst_5 = arith.constant 0.000000e+00 : f32
    %6 = vector.broadcast %cst_5 : f32 to vector<16x64xf32>
    %7 = arith.maximumf %5, %6 : vector<16x64xf32>
    %c0_6 = arith.constant 0 : index
    %c0_7 = arith.constant 0 : index
    %8 = vector.load %arg4[%c0_6, %c0_7] : memref<64x64xf32, #tpu.memory_space<vmem>>, vector<64x64xf32>
    %cst_8 = arith.constant dense<0.000000e+00> : vector<16x64xf32>
    %9 = tpu.matmul %7, %8, %cst_8 {dimension_numbers = #tpu.dot_dimension_numbers<[1], [0], [0], [1], [0, 0, 1, 1], [], []>} : vector<16x64xf32>, vector<64x64xf32>, vector<16x64xf32> -> vector<16x64xf32>
    %c0_9 = arith.constant 0 : index
    %c0_10 = arith.constant 0 : index
    %10 = vector.load %arg5[%c0_9, %c0_10] : memref<1x64xf32, #tpu.memory_space<vmem>>, vector<1x64xf32>
    %11 = vector.broadcast %10 : vector<1x64xf32> to vector<16x64xf32>
    %12 = arith.addf %9, %11 : vector<16x64xf32>
    %cst_11 = arith.constant 0.000000e+00 : f32
    %13 = vector.broadcast %cst_11 : f32 to vector<16x64xf32>
    %14 = arith.maximumf %12, %13 : vector<16x64xf32>
    %c0_12 = arith.constant 0 : index
    %c0_13 = arith.constant 0 : index
    %15 = vector.load %arg6[%c0_12, %c0_13] : memref<64x5xf32, #tpu.memory_space<vmem>>, vector<64x5xf32>
    %cst_14 = arith.constant dense<0.000000e+00> : vector<16x5xf32>
    %16 = tpu.matmul %14, %15, %cst_14 {dimension_numbers = #tpu.dot_dimension_numbers<[1], [0], [0], [1], [0, 0, 1, 1], [], []>} : vector<16x64xf32>, vector<64x5xf32>, vector<16x5xf32> -> vector<16x5xf32>
    %c0_15 = arith.constant 0 : index
    %c0_16 = arith.constant 0 : index
    %17 = vector.load %arg7[%c0_15, %c0_16] : memref<1x5xf32, #tpu.memory_space<vmem>>, vector<1x5xf32>
    %18 = vector.broadcast %17 : vector<1x5xf32> to vector<16x5xf32>
    %19 = arith.addf %16, %18 : vector<16x5xf32>
    %c0_17 = arith.constant 0 : index
    %c0_18 = arith.constant 0 : index
    %20 = vector.load %arg8[%c0_17, %c0_18] : memref<16x5xf32, #tpu.memory_space<vmem>>, vector<16x5xf32>
    tpu.vector_store %arg8[%c0_17, %c0_18], %19 {strides = array<i32>} : memref<16x5xf32, #tpu.memory_space<vmem>>, vector<16x5xf32>,
    return
  }
  func.func @transform_0(%arg0: i32) -> (i32, i32) {
    %c0_i32 = arith.constant 0 : i32
    %c0_i32_0 = arith.constant 0 : i32
    return %arg0, %c0_i32 : i32, i32
  }
  func.func @transform_1(%arg0: i32) -> (i32, i32) {
    %c0_i32 = arith.constant 0 : i32
    %c0_i32_0 = arith.constant 0 : i32
    %c0_i32_1 = arith.constant 0 : i32
    return %c0_i32, %c0_i32_0 : i32, i32
  }
  func.func @transform_2(%arg0: i32) -> (i32, i32) {
    %c0_i32 = arith.constant 0 : i32
    %c0_i32_0 = arith.constant 0 : i32
    %c0_i32_1 = arith.constant 0 : i32
    return %c0_i32, %c0_i32_0 : i32, i32
  }
  func.func @transform_3(%arg0: i32) -> (i32, i32) {
    %c0_i32 = arith.constant 0 : i32
    %c0_i32_0 = arith.constant 0 : i32
    %c0_i32_1 = arith.constant 0 : i32
    return %c0_i32, %c0_i32_0 : i32, i32
  }
  func.func @transform_4(%arg0: i32) -> (i32, i32) {
    %c0_i32 = arith.constant 0 : i32
    %c0_i32_0 = arith.constant 0 : i32
    %c0_i32_1 = arith.constant 0 : i32
    return %c0_i32, %c0_i32_0 : i32, i32
  }
  func.func @transform_5(%arg0: i32) -> (i32, i32) {
    %c0_i32 = arith.constant 0 : i32
    %c0_i32_0 = arith.constant 0 : i32
    %c0_i32_1 = arith.constant 0 : i32
    return %c0_i32, %c0_i32_0 : i32, i32
  }
  func.func @transform_6(%arg0: i32) -> (i32, i32) {
    %c0_i32 = arith.constant 0 : i32
    %c0_i32_0 = arith.constant 0 : i32
    %c0_i32_1 = arith.constant 0 : i32
    return %c0_i32, %c0_i32_0 : i32, i32
  }
  func.func @transform_7(%arg0: i32) -> (i32, i32) {
    %c0_i32 = arith.constant 0 : i32
    %c0_i32_0 = arith.constant 0 : i32
    return %arg0, %c0_i32 : i32, i32
  }
}

</mosaic_0001>

<bundles_post_ra>
// kernel: tpu_custom_call.1
= control target key start
LH: loop header
LB: loop body
LE: loop exit
PB: predicated region body
PF: predicated region fallthrough
CT: control target
= control target key end

     0   :  { %s788_s24 = smov 0   ;;  %s890_s0 = inlined_call_operand.vmem [shape: f32[64,40], index: 0, kind: input, shape index: {}]   ;;  %s891_s1 = inlined_call_operand.vmem [shape: f32[40,64], index: 1, kind: input, shape index: {}]   ;;  %s892_s2 = inlined_call_operand.vmem [shape: f32[1,64], index: 2, kind: input, shape index: {}]   ;;  %s893_s3 = inlined_call_operand.vmem [shape: f32[64,64], index: 3, kind: input, shape index: {}]   ;;  %s894_s4 = inlined_call_operand.vmem [shape: f32[1,64], index: 4, kind: input, shape index: {}]   ;;  %s895_s5 = inlined_call_operand.vmem [shape: f32[64,5], index: 5, kind: input, shape index: {}]   ;;  %s896_s6 = inlined_call_operand.vmem [shape: f32[1,5], index: 6, kind: input, shape index: {}]   ;;  %s897_s7 = inlined_call_operand.vmem [shape: f32[64,5], index: 7, kind: output, shape index: {}]  }
   0x1 LB: > { %s634_s25 = sadd.s32 4294967295, %s746_s24   ;;  %p638_p0 = scmp.ge.s32.totalorder %s746_s24, 1  ;;  %s746_s24 = sphi %s788_s24, %s17_s24  }
   0x2   : > { %p238_p1 = scmp.lt.s32.totalorder %s746_s24, 5 }
   0x4   : > { %p239_p2 = pnand %p638_p0, %p238_p1 }
   0x5   : > { %s639_s30 = sshll.u32 (!%p239_p2), %s634_s25, 1 }
   0x6   : > { %242 = sbr.rel (%p239_p2) target bundleno = 620 (0x26c), region = 48  ;;  %p271_p3 = scmp.lt.s32.totalorder (!%p239_p2), %s639_s30, 7 }
   0xb   : > { %v288_v0 = vld [vmem:[%s891_s1 + $0x20] sm:$0xff]  ;;  %v287_v1 = vld [vmem:[%s891_s1 + $0x18] sm:$0xff]  ;;  %v286_v3 = vld [vmem:[%s891_s1 + $0x10] sm:$0xff]  ;;  %s899_s30 = smov (!%p271_p3, %s639_s30), 7  ;;  %vm296_vm0 = vcmask 326656   ;;  %vm395_vm1 = vcmask 523264  }
   0xc   : > { %681 = vmatprep.subr.mxu0 %v288_v0  ;;  %v387_v2 = vld [vmem:[%s893_s3 + $0x38] sm:$0xff]  ;;  %v386_v4 = vld [vmem:[%s893_s3 + $0x30] sm:$0xff]  ;;  %v385_v5 = vld [vmem:[%s893_s3 + $0x28] sm:$0xff]  ;;  %s640_s18 = sshll.u32 %s899_s30, 3  ;;  %vm575_vm2 = vcmask 39936  }
   0xd   : > { %682 = vmatpush3.msra.mxu0 %v288_v0  ;;  %694 = vmatprep.subr.mxu1 %v387_v2  ;;  %v285_v6 = vld [vmem:[%s891_s1 + $0x8] sm:$0xff]  ;;  %v284_v7 = vld [vmem:[%s891_s1] sm:$0xff]  ;;  %s274_s23 = scalar_lea.vmem %s890_s0, %s640_s18  ;;  %v383_v11 = vld [vmem:[%s893_s3 + $0x18] sm:$0xff]  ;;  %s280_s17 = scalar_lea.vmem %s897_s7, %s640_s18 }
   0xe   : > { %683 = vmatprep.subr.mxu0 %v287_v1  ;;  %695 = vmatpush3.msra.mxu1 %v387_v2  ;;  %v384_v8 = vld [vmem:[%s893_s3 + $0x20] sm:$0xff]  ;;  %v283_v10 = vld [vmem:[%s274_s23 + $0x8] sm:$0xff]  ;;  %v382_v12 = vld [vmem:[%s893_s3 + $0x10] sm:$0xff] }
   0xf   : > { %684 = vmatpush3.msra.mxu0 %v287_v1  ;;  %696 = vmatprep.subr.mxu1 %v386_v4  ;;  %v282_v9 = vld [vmem:[%s274_s23] sm:$0xff]  ;;  %v381_v13 = vld [vmem:[%s893_s3 + $0x8] sm:$0xff]  ;;  %v486_v15 = vld [vmem:[%s895_s5 + $0x38] sm:$0xff] }
  0x10   : > { %685 = vmatprep.subr.mxu0 %v286_v3  ;;  %697 = vmatpush3.msra.mxu1 %v386_v4  ;;  %v380_v14 = vld [vmem:[%s893_s3] sm:$0xff]  ;;  %v485_v16 = vld [vmem:[%s895_s5 + $0x30] sm:$0xff]  ;;  %v484_v17 = vld [vmem:[%s895_s5 + $0x28] sm:$0xff] }
  0x11   : > { %686 = vmatpush3.msra.mxu0 %v286_v3  ;;  %698 = vmatprep.subr.mxu1 %v385_v5  ;;  %v483_v18 = vld [vmem:[%s895_s5 + $0x20] sm:$0xff]  ;;  %v482_v26 = vld [vmem:[%s895_s5 + $0x18] sm:$0xff]  ;;  %v481_v27 = vld [vmem:[%s895_s5 + $0x10] sm:$0xff] }
  0x12   : > { %687 = vmatprep.subr.mxu0 %v285_v6  ;;  %699 = vmatpush3.msra.mxu1 %v385_v5  ;;  %v643_v19 = vld [vmem:[%s892_s2] ss:$0 sm:$0xff]  ;;  %v480_v28 = vld [vmem:[%s895_s5 + $0x8] sm:$0xff] }
  0x13   : > { %688 = vmatpush3.msra.mxu0 %v285_v6  ;;  %691 = vmatprep.mubr.msk.f32.mxu0 %vm296_vm0, %v282_v9  ;;  %v479_v29 = vld [vmem:[%s895_s5] sm:$0xff] }
  0x14   : > { %689 = vmatprep.subr.mxu0 %v284_v7  ;;  %700 = vmatprep.subr.mxu1 %v384_v8  ;;  %v646_v30 = vld [vmem:[%s894_s4] ss:$0 sm:$0xff] }
  0x15   : > { %690 = vmatpush3.msra.mxu0 %v284_v7  ;;  %701 = vmatpush3.msra.mxu1 %v384_v8  ;;  %v649_v38 = vld [vmem:[%s896_s6] ss:$0 sm:$0xff] }
  0x16   : > { %692 = vmatmul.mubr.msk.f32.vlgmr.msra.gmra.mxu0 %vm296_vm0, %v283_v10  ;;  %702 = vmatprep.subr.mxu1 %v383_v11 }
  0x17   : > { %703 = vmatpush3.msra.mxu1 %v383_v11  ;;  %713 = vmatprep.subr.mxu0 %v486_v15 }
  0x18   : > { %704 = vmatprep.subr.mxu1 %v382_v12  ;;  %714 = vmatpush3.msra.mxu0 %v486_v15 }
  0x19   : > { %705 = vmatpush3.msra.mxu1 %v382_v12  ;;  %715 = vmatprep.subr.mxu0 %v485_v16 }
  0x1a   : > { %706 = vmatprep.subr.mxu1 %v381_v13  ;;  %716 = vmatpush3.msra.mxu0 %v485_v16 }
  0x1b   : > { %707 = vmatpush3.msra.mxu1 %v381_v13  ;;  %717 = vmatprep.subr.mxu0 %v484_v17 }
  0x1c   : > { %708 = vmatprep.subr.mxu1 %v380_v14  ;;  %718 = vmatpush3.msra.mxu0 %v484_v17 }
  0x1d   : > { %709 = vmatpush3.msra.mxu1 %v380_v14  ;;  %719 = vmatprep.subr.mxu0 %v483_v18 }
  0x1e   : > { %720 = vmatpush3.msra.mxu0 %v483_v18 }
  0x1f   : > { %721 = vmatprep.subr.mxu0 %v482_v26 }
  0x20   : > { %722 = vmatpush3.msra.mxu0 %v482_v26 }
  0x21   : > { %723 = vmatprep.subr.mxu0 %v481_v27 }
  0x22   : > { %724 = vmatpush3.msra.mxu0 %v481_v27 }
  0x23   : > { %725 = vmatprep.subr.mxu0 %v480_v28 }
  0x24   : > { %726 = vmatpush3.msra.mxu0 %v480_v28 }
  0x25   : > { %727 = vmatprep.subr.mxu0 %v479_v29 }
  0x26   : > { %728 = vmatpush3.msra.mxu0 %v479_v29 }
  0xd6   : > { %v693_v20 = vpop.f32.mrf.mxu0 }
  0xd7   : > { %v375_v21 = vadd.f32 %v693_v20, %v643_v19 }
  0xd8   : > { %v369_v22 = vpop.f32.mrf.mxu0 }
  0xd9   : > { %v370_v23 = vadd.f32 %v643_v19, %v369_v22  ;;  %v379_v25 = vmax.f32 %v375_v21, 0.0 }
  0xdb   : > { %v378_v24 = vmax.f32 %v370_v23, 0.0 }
  0xdd   : > { %710 = vmatprep.mubr.msk.f32.mxu1 %vm395_vm1, %v378_v24 }
  0xde   : > { %711 = vmatmul.mubr.msk.f32.vlgmr.msra.gmra.mxu1 %vm395_vm1, %v379_v25 }
 0x19e   : > { %v712_v31 = vpop.f32.mrf.mxu1 }
 0x19f   : > { %v474_v32 = vadd.f32 %v712_v31, %v646_v30 }
 0x1a0   : > { %v468_v33 = vpop.f32.mrf.mxu1 }
 0x1a1   : > { %v469_v34 = vadd.f32 %v646_v30, %v468_v33  ;;  %v478_v36 = vmax.f32 %v474_v32, 0.0 }
 0x1a3   : > { %v477_v35 = vmax.f32 %v469_v34, 0.0 }
 0x1a5   : > { %729 = vmatprep.mubr.msk.f32.mxu0 %vm395_vm1, %v477_v35 }
 0x1a6   : > { %730 = vmatmul.mubr.msk.f32.vlgmr.msra.gmra.mxu0 %vm395_vm1, %v478_v36 }
 0x266   : > { %v731_v37 = vpop.f32.mrf.mxu0 }
 0x267   : > { %v572_v41 = vadd.f32 %v731_v37, %v649_v38 }
 0x268   : > { %v566_v39 = vpop.f32.mrf.mxu0 }
 0x269   : > { %v567_v40 = vadd.f32 %v649_v38, %v566_v39  ;;  %577 = vst.msk [vmem:[%s280_s17 + $0x8] sm:$0xff] %vm575_vm2, %v572_v41 }
 0x26b   : > { %576 = vst.msk [vmem:[%s280_s17] sm:$0xff] %vm575_vm2, %v567_v40 }
 0x26c PF: > { %s17_s24 = sadd.s32 1, %s746_s24  }
 0x26d   : > { %p14_p4 = scmp.ge.s32.totalorder %s17_s24, 6  }
 0x26f   :  { %16 = sbr.rel (!%p14_p4) target bundleno = 1 (0x1), region = 78 }

</bundles_post_ra>
